<compile_context>
chip_gen: v7x
topology: tpu7x:2x2x1
jax: 0.10.0
libtpu: 0.0.40
codegen_flags: <defaults>
</compile_context>

<pallas_src>
import functools
import math
from dataclasses import dataclass

import jax
import jax.numpy as jnp
from jax import lax
from jax.experimental import pallas as pl
from jax.experimental.pallas import tpu as pltpu


# ----------------------------- Pallas kernel --------------------------------

def _gpt_kernel(x0_ref, vecs_ref, lqw_ref, kvw_ref, cpw_ref, fcw_ref, mpw_ref,
                lnf_ref, wte_ref, logits_ref, x_sc,
                *, n_head, n_latent, seq_len):
    """One grid step == one transformer block; last step also does LN_f+lm_head."""
    layer = pl.program_id(0)
    BT, C = x_sc.shape
    L = n_latent
    T = seq_len
    hs = C // n_head

    @pl.when(layer == 0)
    def _():
        x_sc[...] = x0_ref[...].astype(jnp.float32)

    def layernorm(u, g, b):
        mu = jnp.mean(u, axis=-1, keepdims=True)
        var = jnp.mean((u - mu) ** 2, axis=-1, keepdims=True)
        return (u - mu) * lax.rsqrt(var + 1e-5) * g + b

    x = x_sc[...]                                         # (BT, C) resident in VMEM

    # packed per-layer LN gains & linear biases: (4, 4C)
    vecs = vecs_ref[0]
    ln1_g, ln1_b = vecs[0:1, 0:C], vecs[0:1, C:2 * C]
    ln2_g, ln2_b = vecs[0:1, 2 * C:3 * C], vecs[0:1, 3 * C:4 * C]
    q_b, k_b = vecs[1:2, 0:C], vecs[1:2, C:2 * C]
    v_b, cp_b = vecs[1:2, 2 * C:3 * C], vecs[1:2, 3 * C:4 * C]
    lat_b, mp_b = vecs[2:3, 0:L], vecs[2:3, C:2 * C]
    fc_b = vecs[3:4, :]

    # ---- Multi-Latent Attention (everything stays in vregs/VMEM) ----
    h = layernorm(x, ln1_g, ln1_b)
    # fused latent+query projection: h @ [W_lat | W_q]  -> (BT, L+C)
    hz = jnp.dot(h, lqw_ref[0], preferred_element_type=jnp.float32)
    z = hz[:, :L] + lat_b                                 # (BT, L)
    # fold softmax scale into q once (cheaper than scaling every score tile)
    q = (hz[:, L:] + q_b) * jnp.float32(1.0 / math.sqrt(hs))
    # fused key+value projection: z @ [W_k | W_v] -> (BT, 2C)
    kv = jnp.dot(z, kvw_ref[0], preferred_element_type=jnp.float32)
    k = kv[:, :C] + k_b
    v = kv[:, C:] + v_b

    # block-diagonal causal mask over the flattened (B*T) axis.
    # same-batch test uses float floor (exact for small ints, no integer div).
    row = lax.broadcasted_iota(jnp.int32, (BT, BT), 0)
    col = lax.broadcasted_iota(jnp.int32, (BT, BT), 1)
    inv_t = jnp.float32(1.0 / T)
    same_b = (jnp.floor(row.astype(jnp.float32) * inv_t) ==
              jnp.floor(col.astype(jnp.float32) * inv_t))
    causal = jnp.logical_and(col <= row, same_b)

    cpw = cpw_ref[0]                                      # (C, C)
    attn = None
    for hh in range(n_head):                              # static unroll (tiny H)
        sl = slice(hh * hs, (hh + 1) * hs)
        qh, kh, vh = q[:, sl], k[:, sl], v[:, sl]         # (BT, hs)
        # scores without materializing kh.T: contract last axes directly
        s = lax.dot_general(qh, kh, (((1,), (1,)), ((), ())),
                            preferred_element_type=jnp.float32)   # (BT, BT)
        s = jnp.where(causal, s, jnp.float32(-1e30))      # finite => NaN-safe
        s = s - jnp.max(s, axis=-1, keepdims=True)
        p = jnp.exp(s)
        denom = jnp.sum(p, axis=-1, keepdims=True)
        # flash-style: normalize AFTER the PV matmul (scale (BT,hs), not (BT,BT))
        yh = jnp.dot(p, vh, preferred_element_type=jnp.float32)   # (BT, hs)
        yh = yh * pl.reciprocal(denom, approx=False)
        # head-merge fused into c_proj: y @ Wp == sum_h y_h @ Wp[h*hs:(h+1)*hs, :]
        contrib = jnp.dot(yh, cpw[sl, :], preferred_element_type=jnp.float32)
        attn = contrib if attn is None else attn + contrib
    x = x + attn + cp_b

    # ---- MLP ----
    h = layernorm(x, ln2_g, ln2_b)
    h = jnp.dot(h, fcw_ref[0], preferred_element_type=jnp.float32) + fc_b
    # TODO(synk): PyTorch nn.GELU() default is erf-exact; tanh approximation is
    # used here (Mosaic-safe EUP path), max abs error ~1e-3.
    cg = jnp.float32(math.sqrt(2.0 / math.pi))
    h = 0.5 * h * (1.0 + jnp.tanh(cg * (h + 0.044715 * h * h * h)))
    h = jnp.dot(h, mpw_ref[0], preferred_element_type=jnp.float32) + mp_b
    x = x + h

    x_sc[...] = x                                         # carry to next layer step

    # ---- final LayerNorm + weight-tied lm_head (last grid step only) ----
    @pl.when(layer == pl.num_programs(0) - 1)
    def _():
        lnf = lnf_ref[...]                                # (2, C): [gamma; beta]
        xn = layernorm(x, lnf[0:1, :], lnf[1:2, :])
        # logits = xn @ wte.T, computed without transposing wte (contract C with C)
        logits = lax.dot_general(xn, wte_ref[...], (((1,), (1,)), ((), ())),
                                 preferred_element_type=jnp.float32)  # (BT, V)
        logits_ref[...] = logits.astype(logits_ref.dtype)


# ------------------------------ wrapper --------------------------------------

def pallas_gpt(x_flat, params, cfg, T):
    BT, C = x_flat.shape
    L = cfg.n_latent
    V = cfg.vocab_size
    nl = cfg.n_layer
    kernel = functools.partial(_gpt_kernel, n_head=cfg.n_head,
                               n_latent=L, seq_len=T)

    def per_layer(arr):
        nd = arr.ndim
        return pl.BlockSpec((1,) + arr.shape[1:],
                            lambda l, _nd=nd: (l,) + (0,) * (_nd - 1))

    def const(shape):
        nd = len(shape)
        return pl.BlockSpec(shape, lambda l, _nd=nd: (0,) * _nd)

    return pl.pallas_call(
        kernel,
        out_shape=jax.ShapeDtypeStruct((BT, V), jnp.float32),
        grid=(nl,),
        in_specs=[
            const((BT, C)),                 # embedded input (read at layer 0 only)
            per_layer(params["vecs"]),      # packed LN gains + biases (nl,4,4C)
            per_layer(params["lq_w"]),      # [latent|query] weights   (nl,C,L+C)
            per_layer(params["kv_w"]),      # [key|value] weights      (nl,L,2C)
            per_layer(params["cp_w"]),      # attn c_proj              (nl,C,C)
            per_layer(params["fc_w"]),      # mlp c_fc                 (nl,C,4C)
            per_layer(params["mp_w"]),      # mlp c_proj               (nl,4C,C)
            const((2, C)),                  # final LN gamma/beta
            const((V, C)),                  # tied embedding / lm_head weight
        ],
        out_specs=const((BT, V)),           # lane-dense (V=128), written at last step
        scratch_shapes=[pltpu.VMEM((BT, C), jnp.float32)],   # resident activation
        compiler_params=pltpu.CompilerParams(
            dimension_semantics=("arbitrary",)),   # layers are sequential
    )(x_flat, params["vecs"], params["lq_w"], params["kv_w"], params["cp_w"],
      params["fc_w"], params["mp_w"], params["lnf"], params["wte"])


# ------------------------------ model ----------------------------------------

@dataclass(frozen=True)
class GPTConfig:
    vocab_size: int = 128
    block_size: int = 16
    n_layer: int = 2
    n_head: int = 2
    n_embd: int = 32
    n_latent: int = 16
    dropout: float = 0.0   # eval mode -> dropouts are identities
    bias: bool = True


def init_params(key, cfg):
    C, L, V = cfg.n_embd, cfg.n_latent, cfg.vocab_size
    std = 0.02
    proj_std = 0.02 / math.sqrt(2 * cfg.n_layer)   # c_proj special init
    nl = cfg.n_layer
    keys = iter(jax.random.split(key, 2 + nl * 7))

    def nrm(shape, s=std):
        return (s * jax.random.normal(next(keys), shape)).astype(jnp.float32)

    wte = nrm((V, C))                                  # tied with lm_head
    wpe = nrm((cfg.block_size, C))

    ones_c = jnp.ones((C,), jnp.float32)
    zeros_c = jnp.zeros((C,), jnp.float32)

    vecs, lq_w, kv_w, cp_w, fc_w, mp_w = [], [], [], [], [], []
    for _ in range(nl):
        lat_w = nrm((C, L))
        q_w = nrm((C, C))
        k_w = nrm((L, C))
        v_w = nrm((L, C))
        # packed small vectors (PyTorch init: LN gains = 1, all biases = 0)
        row0 = jnp.concatenate([ones_c, zeros_c, ones_c, zeros_c])   # ln1_g,ln1_b,ln2_g,ln2_b
        row1 = jnp.zeros((4 * C,), jnp.float32)                      # q_b,k_b,v_b,cp_b
        row2 = jnp.zeros((4 * C,), jnp.float32)                      # lat_b(pad),mp_b,pad
        row3 = jnp.zeros((4 * C,), jnp.float32)                      # fc_b
        vecs.append(jnp.stack([row0, row1, row2, row3]))
        lq_w.append(jnp.concatenate([lat_w, q_w], axis=1))           # (C, L+C)
        kv_w.append(jnp.concatenate([k_w, v_w], axis=1))             # (L, 2C)
        cp_w.append(nrm((C, C), proj_std))
        fc_w.append(nrm((C, 4 * C)))
        mp_w.append(nrm((4 * C, C), proj_std))

    return {
        "wte": wte, "wpe": wpe,
        "lnf": jnp.stack([ones_c, zeros_c]),          # (2, C)
        "vecs": jnp.stack(vecs),                      # (nl, 4, 4C)
        "lq_w": jnp.stack(lq_w),                      # (nl, C, L+C)
        "kv_w": jnp.stack(kv_w),                      # (nl, L, 2C)
        "cp_w": jnp.stack(cp_w),                      # (nl, C, C)
        "fc_w": jnp.stack(fc_w),                      # (nl, C, 4C)
        "mp_w": jnp.stack(mp_w),                      # (nl, 4C, C)
    }


def gpt_mla_forward(params, cfg, idx):
    B, T = idx.shape
    C = cfg.n_embd

    # embedding gather + positional add kept as plain-JAX glue
    tok = jnp.take(params["wte"], idx, axis=0)            # (B, T, C)
    pos = params["wpe"][:T]                               # (T, C)
    x = (tok + pos[None, :, :]).astype(jnp.float32)       # dropout(p=0) == identity
    x_flat = x.reshape(B * T, C)                          # batch folded into rows

    logits_all = pallas_gpt(x_flat, params, cfg, T)       # (B*T, vocab) — ONE call
    # inference path: logits only for the last position (weight-tied lm_head)
    logits = logits_all.reshape(B, T, -1)[:, -1:, :]      # (B, 1, vocab), loss=None
    return logits


# ------------------------------- main -----------------------------------------

if __name__ == "__main__":
    cfg = GPTConfig(vocab_size=128, block_size=16, n_layer=2, n_head=2,
                    n_embd=32, n_latent=16, dropout=0.0, bias=True)

    key = jax.random.PRNGKey(0)
    pkey, dkey = jax.random.split(key)
    params = init_params(pkey, cfg)

    B, T = 2, 8
    idx = jax.random.randint(dkey, (B, T), 0, cfg.vocab_size, dtype=jnp.int32)

    fwd = jax.jit(lambda p, i: gpt_mla_forward(p, cfg, i))
    logits = fwd(params, idx)
    jax.block_until_ready(logits)

    assert logits.shape == (B, 1, cfg.vocab_size), logits.shape
    assert bool(jnp.all(jnp.isfinite(logits)))
    print("KERNEL_OK")
</pallas_src>

<mosaic_0001>
module attributes {stable_mosaic.version = 11 : i64} {
  func.func @_gpt_kernel(%arg0: i32, %arg1: memref<16x32xf32, #tpu.memory_space<vmem>>, %arg2: memref<1x4x128xf32, #tpu.memory_space<vmem>>, %arg3: memref<1x32x48xf32, #tpu.memory_space<vmem>>, %arg4: memref<1x16x64xf32, #tpu.memory_space<vmem>>, %arg5: memref<1x32x32xf32, #tpu.memory_space<vmem>>, %arg6: memref<1x32x128xf32, #tpu.memory_space<vmem>>, %arg7: memref<1x128x32xf32, #tpu.memory_space<vmem>>, %arg8: memref<2x32xf32, #tpu.memory_space<vmem>>, %arg9: memref<128x32xf32, #tpu.memory_space<vmem>>, %arg10: memref<16x128xf32, #tpu.memory_space<vmem>>, %arg11: memref<16x32xf32, #tpu.memory_space<vmem>>) attributes {dimension_semantics = [#tpu.dimension_semantics<arbitrary>], iteration_bounds = array<i64: 2>, scalar_prefetch = 0 : i64, scratch_operands = 1 : i64, tpu.core_type = #tpu.core_type<tc>, window_params = [{pipeline_mode = #tpu.pipeline_mode<synchronous>, transform_indices = @transform_0, window_bounds = array<i64: 16, 32>}, {transform_indices = @transform_1, window_bounds = array<i64: 1, 4, 128>}, {transform_indices = @transform_2, window_bounds = array<i64: 1, 32, 48>}, {transform_indices = @transform_3, window_bounds = array<i64: 1, 16, 64>}, {transform_indices = @transform_4, window_bounds = array<i64: 1, 32, 32>}, {transform_indices = @transform_5, window_bounds = array<i64: 1, 32, 128>}, {transform_indices = @transform_6, window_bounds = array<i64: 1, 128, 32>}, {pipeline_mode = #tpu.pipeline_mode<synchronous>, transform_indices = @transform_7, window_bounds = array<i64: 2, 32>}, {pipeline_mode = #tpu.pipeline_mode<synchronous>, transform_indices = @transform_8, window_bounds = array<i64: 128, 32>}, {pipeline_mode = #tpu.pipeline_mode<synchronous>, transform_indices = @transform_9, window_bounds = array<i64: 16, 128>}]} {
    %c0_i32 = arith.constant 0 : i32
    %0 = arith.cmpi eq, %arg0, %c0_i32 : i32
    %1 = arith.extui %0 : i1 to i32
    %c0_i32_0 = arith.constant 0 : i32
    %2 = arith.cmpi ne, %1, %c0_i32_0 : i32
    scf.if %2 {
      %c0_55 = arith.constant 0 : index
      %c0_56 = arith.constant 0 : index
      %166 = vector.load %arg1[%c0_55, %c0_56] : memref<16x32xf32, #tpu.memory_space<vmem>>, vector<16x32xf32>
      %c0_57 = arith.constant 0 : index
      %c0_58 = arith.constant 0 : index
      %167 = vector.load %arg11[%c0_57, %c0_58] : memref<16x32xf32, #tpu.memory_space<vmem>>, vector<16x32xf32>
      tpu.vector_store %arg11[%c0_57, %c0_58], %166 {strides = array<i32>} : memref<16x32xf32, #tpu.memory_space<vmem>>, vector<16x32xf32>,
    } else {
    }
    %c0 = arith.constant 0 : index
    %c0_1 = arith.constant 0 : index
    %3 = vector.load %arg11[%c0, %c0_1] : memref<16x32xf32, #tpu.memory_space<vmem>>, vector<16x32xf32>
    %c0_2 = arith.constant 0 : index
    %c0_3 = arith.constant 0 : index
    %c0_4 = arith.constant 0 : index
    %4 = vector.load %arg2[%c0_2, %c0_3, %c0_4] : memref<1x4x128xf32, #tpu.memory_space<vmem>>, vector<1x4x128xf32>
    %5 = vector.shape_cast %4 : vector<1x4x128xf32> to vector<4x128xf32>
    %6 = vector.extract_strided_slice %5 {offsets = [0, 0], sizes = [1, 32], strides = [1, 1]} : vector<4x128xf32> to vector<1x32xf32>
    %7 = vector.extract_strided_slice %5 {offsets = [0, 32], sizes = [1, 32], strides = [1, 1]} : vector<4x128xf32> to vector<1x32xf32>
    %8 = vector.extract_strided_slice %5 {offsets = [0, 64], sizes = [1, 32], strides = [1, 1]} : vector<4x128xf32> to vector<1x32xf32>
    %9 = vector.extract_strided_slice %5 {offsets = [0, 96], sizes = [1, 32], strides = [1, 1]} : vector<4x128xf32> to vector<1x32xf32>
    %10 = vector.extract_strided_slice %5 {offsets = [1, 0], sizes = [1, 32], strides = [1, 1]} : vector<4x128xf32> to vector<1x32xf32>
    %11 = vector.extract_strided_slice %5 {offsets = [1, 32], sizes = [1, 32], strides = [1, 1]} : vector<4x128xf32> to vector<1x32xf32>
    %12 = vector.extract_strided_slice %5 {offsets = [1, 64], sizes = [1, 32], strides = [1, 1]} : vector<4x128xf32> to vector<1x32xf32>
    %13 = vector.extract_strided_slice %5 {offsets = [1, 96], sizes = [1, 32], strides = [1, 1]} : vector<4x128xf32> to vector<1x32xf32>
    %14 = vector.extract_strided_slice %5 {offsets = [2, 0], sizes = [1, 16], strides = [1, 1]} : vector<4x128xf32> to vector<1x16xf32>
    %15 = vector.extract_strided_slice %5 {offsets = [2, 32], sizes = [1, 32], strides = [1, 1]} : vector<4x128xf32> to vector<1x32xf32>
    %16 = vector.extract_strided_slice %5 {offsets = [3, 0], sizes = [1, 128], strides = [1, 1]} : vector<4x128xf32> to vector<1x128xf32>
    %cst = arith.constant dense<0.000000e+00> : vector<16xf32>
    %17 = vector.multi_reduction <add>, %3, %cst [1] : vector<16x32xf32> to vector<16xf32>
    %18 = vector.shape_cast %17 : vector<16xf32> to vector<16x1xf32>
    %cst_5 = arith.constant 3.200000e+01 : f32
    %19 = vector.broadcast %cst_5 : f32 to vector<16x1xf32>
    %20 = arith.divf %18, %19 : vector<16x1xf32>
    %21 = vector.broadcast %20 : vector<16x1xf32> to vector<16x32xf32>
    %22 = arith.subf %3, %21 : vector<16x32xf32>
    %23 = arith.mulf %22, %22 : vector<16x32xf32>
    %cst_6 = arith.constant dense<0.000000e+00> : vector<16xf32>
    %24 = vector.multi_reduction <add>, %23, %cst_6 [1] : vector<16x32xf32> to vector<16xf32>
    %25 = vector.shape_cast %24 : vector<16xf32> to vector<16x1xf32>
    %cst_7 = arith.constant 3.200000e+01 : f32
    %26 = vector.broadcast %cst_7 : f32 to vector<16x1xf32>
    %27 = arith.divf %25, %26 : vector<16x1xf32>
    %28 = vector.broadcast %20 : vector<16x1xf32> to vector<16x32xf32>
    %29 = arith.subf %3, %28 : vector<16x32xf32>
    %cst_8 = arith.constant 9.99999974E-6 : f32
    %30 = vector.broadcast %cst_8 : f32 to vector<16x1xf32>
    %31 = arith.addf %27, %30 : vector<16x1xf32>
    %32 = math.rsqrt %31 : vector<16x1xf32>
    %33 = vector.broadcast %32 : vector<16x1xf32> to vector<16x32xf32>
    %34 = arith.mulf %29, %33 : vector<16x32xf32>
    %35 = vector.broadcast %6 : vector<1x32xf32> to vector<16x32xf32>
    %36 = arith.mulf %34, %35 : vector<16x32xf32>
    %37 = vector.broadcast %7 : vector<1x32xf32> to vector<16x32xf32>
    %38 = arith.addf %36, %37 : vector<16x32xf32>
    %c0_9 = arith.constant 0 : index
    %c0_10 = arith.constant 0 : index
    %c0_11 = arith.constant 0 : index
    %39 = vector.load %arg3[%c0_9, %c0_10, %c0_11] : memref<1x32x48xf32, #tpu.memory_space<vmem>>, vector<1x32x48xf32>
    %40 = vector.shape_cast %39 : vector<1x32x48xf32> to vector<32x48xf32>
    %cst_12 = arith.constant dense<0.000000e+00> : vector<16x48xf32>
    %41 = tpu.matmul %38, %40, %cst_12 {dimension_numbers = #tpu.dot_dimension_numbers<[1], [0], [0], [1], [0, 0, 1, 1], [], []>} : vector<16x32xf32>, vector<32x48xf32>, vector<16x48xf32> -> vector<16x48xf32>
    %42 = vector.extract_strided_slice %41 {offsets = [0, 0], sizes = [16, 16], strides = [1, 1]} : vector<16x48xf32> to vector<16x16xf32>
    %43 = vector.broadcast %14 : vector<1x16xf32> to vector<16x16xf32>
    %44 = arith.addf %42, %43 : vector<16x16xf32>
    %45 = vector.extract_strided_slice %41 {offsets = [0, 16], sizes = [16, 32], strides = [1, 1]} : vector<16x48xf32> to vector<16x32xf32>
    %46 = vector.broadcast %10 : vector<1x32xf32> to vector<16x32xf32>
    %47 = arith.addf %45, %46 : vector<16x32xf32>
    %cst_13 = arith.constant 2.500000e-01 : f32
    %48 = vector.broadcast %cst_13 : f32 to vector<16x32xf32>
    %49 = arith.mulf %47, %48 : vector<16x32xf32>
    %c0_14 = arith.constant 0 : index
    %c0_15 = arith.constant 0 : index
    %c0_16 = arith.constant 0 : index
    %50 = vector.load %arg4[%c0_14, %c0_15, %c0_16] : memref<1x16x64xf32, #tpu.memory_space<vmem>>, vector<1x16x64xf32>
    %51 = vector.shape_cast %50 : vector<1x16x64xf32> to vector<16x64xf32>
    %cst_17 = arith.constant dense<0.000000e+00> : vector<16x64xf32>
    %52 = tpu.matmul %44, %51, %cst_17 {dimension_numbers = #tpu.dot_dimension_numbers<[1], [0], [0], [1], [0, 0, 1, 1], [], []>} : vector<16x16xf32>, vector<16x64xf32>, vector<16x64xf32> -> vector<16x64xf32>
    %53 = vector.extract_strided_slice %52 {offsets = [0, 0], sizes = [16, 32], strides = [1, 1]} : vector<16x64xf32> to vector<16x32xf32>
    %54 = vector.broadcast %11 : vector<1x32xf32> to vector<16x32xf32>
    %55 = arith.addf %53, %54 : vector<16x32xf32>
    %56 = vector.extract_strided_slice %52 {offsets = [0, 32], sizes = [16, 32], strides = [1, 1]} : vector<16x64xf32> to vector<16x32xf32>
    %57 = vector.broadcast %12 : vector<1x32xf32> to vector<16x32xf32>
    %58 = arith.addf %56, %57 : vector<16x32xf32>
    %59 = tpu.iota {dimensions = array<i32: 0>} : vector<16x16xi32>
    %60 = tpu.iota {dimensions = array<i32: 1>} : vector<16x16xi32>
    %61 = arith.sitofp %59 : vector<16x16xi32> to vector<16x16xf32>
    %cst_18 = arith.constant 1.250000e-01 : f32
    %62 = vector.broadcast %cst_18 : f32 to vector<16x16xf32>
    %63 = arith.mulf %61, %62 : vector<16x16xf32>
    %64 = math.floor %63 : vector<16x16xf32>
    %65 = arith.sitofp %60 : vector<16x16xi32> to vector<16x16xf32>
    %cst_19 = arith.constant 1.250000e-01 : f32
    %66 = vector.broadcast %cst_19 : f32 to vector<16x16xf32>
    %67 = arith.mulf %65, %66 : vector<16x16xf32>
    %68 = math.floor %67 : vector<16x16xf32>
    %69 = arith.cmpf oeq, %64, %68 : vector<16x16xf32>
    %70 = arith.cmpi sle, %60, %59 : vector<16x16xi32>
    %71 = arith.andi %70, %69 : vector<16x16xi1>
    %c0_20 = arith.constant 0 : index
    %c0_21 = arith.constant 0 : index
    %c0_22 = arith.constant 0 : index
    %72 = vector.load %arg5[%c0_20, %c0_21, %c0_22] : memref<1x32x32xf32, #tpu.memory_space<vmem>>, vector<1x32x32xf32>
    %73 = vector.shape_cast %72 : vector<1x32x32xf32> to vector<32x32xf32>
    %74 = vector.extract_strided_slice %49 {offsets = [0, 0], sizes = [16, 16], strides = [1, 1]} : vector<16x32xf32> to vector<16x16xf32>
    %75 = vector.extract_strided_slice %55 {offsets = [0, 0], sizes = [16, 16], strides = [1, 1]} : vector<16x32xf32> to vector<16x16xf32>
    %76 = vector.extract_strided_slice %58 {offsets = [0, 0], sizes = [16, 16], strides = [1, 1]} : vector<16x32xf32> to vector<16x16xf32>
    %cst_23 = arith.constant dense<0.000000e+00> : vector<16x16xf32>
    %77 = tpu.matmul %74, %75, %cst_23 {dimension_numbers = #tpu.dot_dimension_numbers<[1], [1], [0], [0], [0, 0, 1, 0], [], []>} : vector<16x16xf32>, vector<16x16xf32>, vector<16x16xf32> -> vector<16x16xf32>
    %cst_24 = arith.constant -1.000000e+30 : f32
    %78 = vector.broadcast %cst_24 : f32 to vector<16x16xf32>
    %79 = arith.select %71, %77, %78 : vector<16x16xi1>, vector<16x16xf32>
    %cst_25 = arith.constant dense<0xFF800000> : vector<16xf32>
    %80 = vector.multi_reduction <maximumf>, %79, %cst_25 [1] : vector<16x16xf32> to vector<16xf32>
    %81 = vector.shape_cast %80 : vector<16xf32> to vector<16x1xf32>
    %82 = vector.broadcast %81 : vector<16x1xf32> to vector<16x16xf32>
    %83 = arith.subf %79, %82 : vector<16x16xf32>
    %84 = math.exp %83 : vector<16x16xf32>
    %cst_26 = arith.constant dense<0.000000e+00> : vector<16xf32>
    %85 = vector.multi_reduction <add>, %84, %cst_26 [1] : vector<16x16xf32> to vector<16xf32>
    %86 = vector.shape_cast %85 : vector<16xf32> to vector<16x1xf32>
    %cst_27 = arith.constant dense<0.000000e+00> : vector<16x16xf32>
    %87 = tpu.matmul %84, %76, %cst_27 {dimension_numbers = #tpu.dot_dimension_numbers<[1], [0], [0], [1], [0, 0, 1, 1], [], []>} : vector<16x16xf32>, vector<16x16xf32>, vector<16x16xf32> -> vector<16x16xf32>
    %88 = tpu.reciprocal %86 : vector<16x1xf32> -> vector<16x1xf32>
    %89 = vector.broadcast %88 : vector<16x1xf32> to vector<16x16xf32>
    %90 = arith.mulf %87, %89 : vector<16x16xf32>
    %91 = vector.extract_strided_slice %73 {offsets = [0, 0], sizes = [16, 32], strides = [1, 1]} : vector<32x32xf32> to vector<16x32xf32>
    %cst_28 = arith.constant dense<0.000000e+00> : vector<16x32xf32>
    %92 = tpu.matmul %90, %91, %cst_28 {dimension_numbers = #tpu.dot_dimension_numbers<[1], [0], [0], [1], [0, 0, 1, 1], [], []>} : vector<16x16xf32>, vector<16x32xf32>, vector<16x32xf32> -> vector<16x32xf32>
    %93 = vector.extract_strided_slice %49 {offsets = [0, 16], sizes = [16, 16], strides = [1, 1]} : vector<16x32xf32> to vector<16x16xf32>
    %94 = vector.extract_strided_slice %55 {offsets = [0, 16], sizes = [16, 16], strides = [1, 1]} : vector<16x32xf32> to vector<16x16xf32>
    %95 = vector.extract_strided_slice %58 {offsets = [0, 16], sizes = [16, 16], strides = [1, 1]} : vector<16x32xf32> to vector<16x16xf32>
    %cst_29 = arith.constant dense<0.000000e+00> : vector<16x16xf32>
    %96 = tpu.matmul %93, %94, %cst_29 {dimension_numbers = #tpu.dot_dimension_numbers<[1], [1], [0], [0], [0, 0, 1, 0], [], []>} : vector<16x16xf32>, vector<16x16xf32>, vector<16x16xf32> -> vector<16x16xf32>
    %cst_30 = arith.constant -1.000000e+30 : f32
    %97 = vector.broadcast %cst_30 : f32 to vector<16x16xf32>
    %98 = arith.select %71, %96, %97 : vector<16x16xi1>, vector<16x16xf32>
    %cst_31 = arith.constant dense<0xFF800000> : vector<16xf32>
    %99 = vector.multi_reduction <maximumf>, %98, %cst_31 [1] : vector<16x16xf32> to vector<16xf32>
    %100 = vector.shape_cast %99 : vector<16xf32> to vector<16x1xf32>
    %101 = vector.broadcast %100 : vector<16x1xf32> to vector<16x16xf32>
    %102 = arith.subf %98, %101 : vector<16x16xf32>
    %103 = math.exp %102 : vector<16x16xf32>
    %cst_32 = arith.constant dense<0.000000e+00> : vector<16xf32>
    %104 = vector.multi_reduction <add>, %103, %cst_32 [1] : vector<16x16xf32> to vector<16xf32>
    %105 = vector.shape_cast %104 : vector<16xf32> to vector<16x1xf32>
    %cst_33 = arith.constant dense<0.000000e+00> : vector<16x16xf32>
    %106 = tpu.matmul %103, %95, %cst_33 {dimension_numbers = #tpu.dot_dimension_numbers<[1], [0], [0], [1], [0, 0, 1, 1], [], []>} : vector<16x16xf32>, vector<16x16xf32>, vector<16x16xf32> -> vector<16x16xf32>
    %107 = tpu.reciprocal %105 : vector<16x1xf32> -> vector<16x1xf32>
    %108 = vector.broadcast %107 : vector<16x1xf32> to vector<16x16xf32>
    %109 = arith.mulf %106, %108 : vector<16x16xf32>
    %110 = vector.extract_strided_slice %73 {offsets = [16, 0], sizes = [16, 32], strides = [1, 1]} : vector<32x32xf32> to vector<16x32xf32>
    %cst_34 = arith.constant dense<0.000000e+00> : vector<16x32xf32>
    %111 = tpu.matmul %109, %110, %cst_34 {dimension_numbers = #tpu.dot_dimension_numbers<[1], [0], [0], [1], [0, 0, 1, 1], [], []>} : vector<16x16xf32>, vector<16x32xf32>, vector<16x32xf32> -> vector<16x32xf32>
    %112 = arith.addf %92, %111 : vector<16x32xf32>
    %113 = arith.addf %3, %112 : vector<16x32xf32>
    %114 = vector.broadcast %13 : vector<1x32xf32> to vector<16x32xf32>
    %115 = arith.addf %113, %114 : vector<16x32xf32>
    %cst_35 = arith.constant dense<0.000000e+00> : vector<16xf32>
    %116 = vector.multi_reduction <add>, %115, %cst_35 [1] : vector<16x32xf32> to vector<16xf32>
    %117 = vector.shape_cast %116 : vector<16xf32> to vector<16x1xf32>
    %cst_36 = arith.constant 3.200000e+01 : f32
    %118 = vector.broadcast %cst_36 : f32 to vector<16x1xf32>
    %119 = arith.divf %117, %118 : vector<16x1xf32>
    %120 = vector.broadcast %119 : vector<16x1xf32> to vector<16x32xf32>
    %121 = arith.subf %115, %120 : vector<16x32xf32>
    %122 = arith.mulf %121, %121 : vector<16x32xf32>
    %cst_37 = arith.constant dense<0.000000e+00> : vector<16xf32>
    %123 = vector.multi_reduction <add>, %122, %cst_37 [1] : vector<16x32xf32> to vector<16xf32>
    %124 = vector.shape_cast %123 : vector<16xf32> to vector<16x1xf32>
    %cst_38 = arith.constant 3.200000e+01 : f32
    %125 = vector.broadcast %cst_38 : f32 to vector<16x1xf32>
    %126 = arith.divf %124, %125 : vector<16x1xf32>
    %127 = vector.broadcast %119 : vector<16x1xf32> to vector<16x32xf32>
    %128 = arith.subf %115, %127 : vector<16x32xf32>
    %cst_39 = arith.constant 9.99999974E-6 : f32
    %129 = vector.broadcast %cst_39 : f32 to vector<16x1xf32>
    %130 = arith.addf %126, %129 : vector<16x1xf32>
    %131 = math.rsqrt %130 : vector<16x1xf32>
    %132 = vector.broadcast %131 : vector<16x1xf32> to vector<16x32xf32>
    %133 = arith.mulf %128, %132 : vector<16x32xf32>
    %134 = vector.broadcast %8 : vector<1x32xf32> to vector<16x32xf32>
    %135 = arith.mulf %133, %134 : vector<16x32xf32>
    %136 = vector.broadcast %9 : vector<1x32xf32> to vector<16x32xf32>
    %137 = arith.addf %135, %136 : vector<16x32xf32>
    %c0_40 = arith.constant 0 : index
    %c0_41 = arith.constant 0 : index
    %c0_42 = arith.constant 0 : index
    %138 = vector.load %arg6[%c0_40, %c0_41, %c0_42] : memref<1x32x128xf32, #tpu.memory_space<vmem>>, vector<1x32x128xf32>
    %139 = vector.shape_cast %138 : vector<1x32x128xf32> to vector<32x128xf32>
    %cst_43 = arith.constant dense<0.000000e+00> : vector<16x128xf32>
    %140 = tpu.matmul %137, %139, %cst_43 {dimension_numbers = #tpu.dot_dimension_numbers<[1], [0], [0], [1], [0, 0, 1, 1], [], []>} : vector<16x32xf32>, vector<32x128xf32>, vector<16x128xf32> -> vector<16x128xf32>
    %141 = vector.broadcast %16 : vector<1x128xf32> to vector<16x128xf32>
    %142 = arith.addf %140, %141 : vector<16x128xf32>
    %cst_44 = arith.constant 5.000000e-01 : f32
    %143 = vector.broadcast %cst_44 : f32 to vector<16x128xf32>
    %144 = arith.mulf %143, %142 : vector<16x128xf32>
    %cst_45 = arith.constant 4.471500e-02 : f32
    %145 = vector.broadcast %cst_45 : f32 to vector<16x128xf32>
    %146 = arith.mulf %145, %142 : vector<16x128xf32>
    %147 = arith.mulf %146, %142 : vector<16x128xf32>
    %148 = arith.mulf %147, %142 : vector<16x128xf32>
    %149 = arith.addf %142, %148 : vector<16x128xf32>
    %cst_46 = arith.constant 0.797884583 : f32
    %150 = vector.broadcast %cst_46 : f32 to vector<16x128xf32>
    %151 = arith.mulf %150, %149 : vector<16x128xf32>
    %152 = math.tanh %151 : vector<16x128xf32>
    %cst_47 = arith.constant 1.000000e+00 : f32
    %153 = vector.broadcast %cst_47 : f32 to vector<16x128xf32>
    %154 = arith.addf %153, %152 : vector<16x128xf32>
    %155 = arith.mulf %144, %154 : vector<16x128xf32>
    %c0_48 = arith.constant 0 : index
    %c0_49 = arith.constant 0 : index
    %c0_50 = arith.constant 0 : index
    %156 = vector.load %arg7[%c0_48, %c0_49, %c0_50] : memref<1x128x32xf32, #tpu.memory_space<vmem>>, vector<1x128x32xf32>
    %157 = vector.shape_cast %156 : vector<1x128x32xf32> to vector<128x32xf32>
    %cst_51 = arith.constant dense<0.000000e+00> : vector<16x32xf32>
    %158 = tpu.matmul %155, %157, %cst_51 {dimension_numbers = #tpu.dot_dimension_numbers<[1], [0], [0], [1], [0, 0, 1, 1], [], []>} : vector<16x128xf32>, vector<128x32xf32>, vector<16x32xf32> -> vector<16x32xf32>
    %159 = vector.broadcast %15 : vector<1x32xf32> to vector<16x32xf32>
    %160 = arith.addf %158, %159 : vector<16x32xf32>
    %161 = arith.addf %115, %160 : vector<16x32xf32>
    %c0_52 = arith.constant 0 : index
    %c0_53 = arith.constant 0 : index
    %162 = vector.load %arg11[%c0_52, %c0_53] : memref<16x32xf32, #tpu.memory_space<vmem>>, vector<16x32xf32>
    tpu.vector_store %arg11[%c0_52, %c0_53], %161 {strides = array<i32>} : memref<16x32xf32, #tpu.memory_space<vmem>>, vector<16x32xf32>,
    %c1_i32 = arith.constant 1 : i32
    %163 = arith.cmpi eq, %arg0, %c1_i32 : i32
    %164 = arith.extui %163 : i1 to i32
    %c0_i32_54 = arith.constant 0 : i32
    %165 = arith.cmpi ne, %164, %c0_i32_54 : i32
    scf.if %165 {
      %c0_55 = arith.constant 0 : index
      %c0_56 = arith.constant 0 : index
      %166 = vector.load %arg8[%c0_55, %c0_56] : memref<2x32xf32, #tpu.memory_space<vmem>>, vector<2x32xf32>
      %167 = vector.extract_strided_slice %166 {offsets = [0, 0], sizes = [1, 32], strides = [1, 1]} : vector<2x32xf32> to vector<1x32xf32>
      %168 = vector.extract_strided_slice %166 {offsets = [1, 0], sizes = [1, 32], strides = [1, 1]} : vector<2x32xf32> to vector<1x32xf32>
      %cst_57 = arith.constant dense<0.000000e+00> : vector<16xf32>
      %169 = vector.multi_reduction <add>, %161, %cst_57 [1] : vector<16x32xf32> to vector<16xf32>
      %170 = vector.shape_cast %169 : vector<16xf32> to vector<16x1xf32>
      %cst_58 = arith.constant 3.200000e+01 : f32
      %171 = vector.broadcast %cst_58 : f32 to vector<16x1xf32>
      %172 = arith.divf %170, %171 : vector<16x1xf32>
      %173 = vector.broadcast %172 : vector<16x1xf32> to vector<16x32xf32>
      %174 = arith.subf %161, %173 : vector<16x32xf32>
      %175 = arith.mulf %174, %174 : vector<16x32xf32>
      %cst_59 = arith.constant dense<0.000000e+00> : vector<16xf32>
      %176 = vector.multi_reduction <add>, %175, %cst_59 [1] : vector<16x32xf32> to vector<16xf32>
      %177 = vector.shape_cast %176 : vector<16xf32> to vector<16x1xf32>
      %cst_60 = arith.constant 3.200000e+01 : f32
      %178 = vector.broadcast %cst_60 : f32 to vector<16x1xf32>
      %179 = arith.divf %177, %178 : vector<16x1xf32>
      %180 = vector.broadcast %172 : vector<16x1xf32> to vector<16x32xf32>
      %181 = arith.subf %161, %180 : vector<16x32xf32>
      %cst_61 = arith.constant 9.99999974E-6 : f32
      %182 = vector.broadcast %cst_61 : f32 to vector<16x1xf32>
      %183 = arith.addf %179, %182 : vector<16x1xf32>
      %184 = math.rsqrt %183 : vector<16x1xf32>
      %185 = vector.broadcast %184 : vector<16x1xf32> to vector<16x32xf32>
      %186 = arith.mulf %181, %185 : vector<16x32xf32>
      %187 = vector.broadcast %167 : vector<1x32xf32> to vector<16x32xf32>
      %188 = arith.mulf %186, %187 : vector<16x32xf32>
      %189 = vector.broadcast %168 : vector<1x32xf32> to vector<16x32xf32>
      %190 = arith.addf %188, %189 : vector<16x32xf32>
      %c0_62 = arith.constant 0 : index
      %c0_63 = arith.constant 0 : index
      %191 = vector.load %arg9[%c0_62, %c0_63] : memref<128x32xf32, #tpu.memory_space<vmem>>, vector<128x32xf32>
      %cst_64 = arith.constant dense<0.000000e+00> : vector<16x128xf32>
      %192 = tpu.matmul %190, %191, %cst_64 {dimension_numbers = #tpu.dot_dimension_numbers<[1], [1], [0], [0], [0, 0, 1, 0], [], []>} : vector<16x32xf32>, vector<128x32xf32>, vector<16x128xf32> -> vector<16x128xf32>
      %c0_65 = arith.constant 0 : index
      %c0_66 = arith.constant 0 : index
      %193 = vector.load %arg10[%c0_65, %c0_66] : memref<16x128xf32, #tpu.memory_space<vmem>>, vector<16x128xf32>
      tpu.vector_store %arg10[%c0_65, %c0_66], %192 {strides = array<i32>} : memref<16x128xf32, #tpu.memory_space<vmem>>, vector<16x128xf32>,
    } else {
    }
    return
  }
  func.func @transform_0(%arg0: i32) -> (i32, i32) {
    %c0_i32 = arith.constant 0 : i32
    %c0_i32_0 = arith.constant 0 : i32
    %c0_i32_1 = arith.constant 0 : i32
    return %c0_i32, %c0_i32_0 : i32, i32
  }
  func.func @transform_1(%arg0: i32) -> (i32, i32, i32) {
    %c0_i32 = arith.constant 0 : i32
    %c0_i32_0 = arith.constant 0 : i32
    %c0_i32_1 = arith.constant 0 : i32
    return %arg0, %c0_i32, %c0_i32_0 : i32, i32, i32
  }
  func.func @transform_2(%arg0: i32) -> (i32, i32, i32) {
    %c0_i32 = arith.constant 0 : i32
    %c0_i32_0 = arith.constant 0 : i32
    %c0_i32_1 = arith.constant 0 : i32
    return %arg0, %c0_i32, %c0_i32_0 : i32, i32, i32
  }
  func.func @transform_3(%arg0: i32) -> (i32, i32, i32) {
    %c0_i32 = arith.constant 0 : i32
    %c0_i32_0 = arith.constant 0 : i32
    %c0_i32_1 = arith.constant 0 : i32
    return %arg0, %c0_i32, %c0_i32_0 : i32, i32, i32
  }
  func.func @transform_4(%arg0: i32) -> (i32, i32, i32) {
    %c0_i32 = arith.constant 0 : i32
    %c0_i32_0 = arith.constant 0 : i32
    %c0_i32_1 = arith.constant 0 : i32
    return %arg0, %c0_i32, %c0_i32_0 : i32, i32, i32
  }
  func.func @transform_5(%arg0: i32) -> (i32, i32, i32) {
    %c0_i32 = arith.constant 0 : i32
    %c0_i32_0 = arith.constant 0 : i32
    %c0_i32_1 = arith.constant 0 : i32
    return %arg0, %c0_i32, %c0_i32_0 : i32, i32, i32
  }
  func.func @transform_6(%arg0: i32) -> (i32, i32, i32) {
    %c0_i32 = arith.constant 0 : i32
    %c0_i32_0 = arith.constant 0 : i32
    %c0_i32_1 = arith.constant 0 : i32
    return %arg0, %c0_i32, %c0_i32_0 : i32, i32, i32
  }
  func.func @transform_7(%arg0: i32) -> (i32, i32) {
    %c0_i32 = arith.constant 0 : i32
    %c0_i32_0 = arith.constant 0 : i32
    %c0_i32_1 = arith.constant 0 : i32
    return %c0_i32, %c0_i32_0 : i32, i32
  }
  func.func @transform_8(%arg0: i32) -> (i32, i32) {
    %c0_i32 = arith.constant 0 : i32
    %c0_i32_0 = arith.constant 0 : i32
    %c0_i32_1 = arith.constant 0 : i32
    return %c0_i32, %c0_i32_0 : i32, i32
  }
  func.func @transform_9(%arg0: i32) -> (i32, i32) {
    %c0_i32 = arith.constant 0 : i32
    %c0_i32_0 = arith.constant 0 : i32
    %c0_i32_1 = arith.constant 0 : i32
    return %c0_i32, %c0_i32_0 : i32, i32
  }
}

</mosaic_0001>

<bundles_post_ra>
// kernel: _lambda_.1
= control target key start
LH: loop header
LB: loop body
LE: loop exit
PB: predicated region body
PF: predicated region fallthrough
CT: control target
= control target key end

     0   :  { %s2312_s30 = smov 0   ;;  %s2641_s0 = inlined_call_operand.vmem [shape: f32[16,32], index: 0, kind: input, shape index: {}]   ;;  %s2642_s1 = inlined_call_operand.vmem [shape: f32[2,4,128], index: 1, kind: input, shape index: {}]   ;;  %s2643_s2 = inlined_call_operand.vmem [shape: f32[2,32,48], index: 2, kind: input, shape index: {}]   ;;  %s2644_s3 = inlined_call_operand.vmem [shape: f32[2,16,64], index: 3, kind: input, shape index: {}]   ;;  %s2645_s4 = inlined_call_operand.vmem [shape: f32[2,32,32], index: 4, kind: input, shape index: {}]   ;;  %s2646_s5 = inlined_call_operand.vmem [shape: f32[2,32,128], index: 5, kind: input, shape index: {}]   ;;  %s2647_s6 = inlined_call_operand.vmem [shape: f32[2,128,32], index: 6, kind: input, shape index: {}]   ;;  %s2648_s7 = inlined_call_operand.vmem [shape: f32[2,32], index: 7, kind: input, shape index: {}]   ;;  %s2649_s8 = inlined_call_operand.vmem [shape: f32[128,32], index: 8, kind: input, shape index: {}]   ;;  %s2650_s9 = inlined_call_operand.vmem [shape: f32[16,128], index: 9, kind: output, shape index: {}]  }
   0x1 LB: > { %s2318_s10 = sadd.s32 4294967295, %s2254_s30   ;;  %p1779_p0 = scmp.ge.s32.totalorder %s2254_s30, 1  ;;  %s2254_s30 = sphi %s2312_s30, %s19_s30  }
   0x2   : > { %p331_p1 = scmp.lt.s32.totalorder %s2254_s30, 3 }
   0x4   : > { %p332_p2 = pnand %p1779_p0, %p331_p1 }
   0x5   : > { %p386_p3 = scmp.lt.s32.totalorder (!%p332_p2), %s2318_s10, 1  ;;  %p1791_p4 = scmp.ne.s32.totalorder (!%p332_p2), %s2318_s10, 0 }
   0x6   : > { %335 = sbr.rel (%p332_p2) target bundleno = 3282 (0xcd2), region = 56 }
   0xd   : > { %s387_s11 = scalar_select %p386_p3, %s2318_s10, 1 }
   0xe   : > { %418 = sbr.rel (%p1791_p4) target bundleno = 21 (0x15), region = 60  ;;  %v419_v0 = vld [vmem:[%s2641_s0] sm:$0xff] (!%p1791_p4)  ;;  %vm421_vm0 = vcmask (!%p1791_p4), 261120   ;;  %v420_v1 = vld [vmem:[%s2641_s0 + $0x8] sm:$0xff] (!%p1791_p4) }
   0xf   : > { %s1780_s12 = sshll.u32 %s387_s11, 2  ;;  %s1835_s13 = sshll.u32 %s387_s11, 5  ;;  %422 = vst.msk [vmem:[#allocation2] sm:$0xff] (!%p1791_p4), %vm421_vm0, %v419_v0  ;;  %423 = vst.msk [vmem:[#allocation2 + $0x8] sm:$0xff] (!%p1791_p4), %vm421_vm0, %v420_v1 }
  0x10   : > { %s389_s16 = scalar_lea.vmem %s2642_s1, %s1780_s12  ;;  %s2330_s19 = scalar_lea.vmem %s2643_s2, %s1835_s13 }
  0x11   : > { %s1836_s20 = sshll.u32 %s387_s11, 4  ;;  %s2335_s23 = scalar_lea.vmem %s2645_s4, %s1835_s13 }
  0x12   : > { %s2340_s26 = scalar_lea.vmem %s2644_s3, %s1836_s20  ;;  %s2345_s29 = scalar_lea.vmem %s2646_s5, %s1835_s13 }
  0x13   : > { %s1839_s12 = sshll.u32 %s387_s11, 7 }
  0x14   : > { %s2350_s17 = scalar_lea.vmem %s2647_s6, %s1839_s12 }
  0x15 PF: > { %vm427_vm1 = vcmask 261120   ;;  %v455_v6 = vlaneseq  ;;  %v2370_v8 = vld [vmem:[%s389_s16] sm:$0xf]  ;;  %s2256_s11 = smov 96   ;;  %v468_v22 = vld [vmem:[%s2330_s19 + $0x8] sm:$0xff]  ;;  %v469_v24 = vld [vmem:[%s2330_s19 + $0x10] sm:$0xff] }
  0x16   : > { %v2359_v2 = vld [vmem:[#allocation2] sm:$0xff]  ;;  %v2361_v3 = vld [vmem:[#allocation2 + $0x8] sm:$0xff]  ;;  %v470_v25 = vld [vmem:[%s2330_s19 + $0x18] sm:$0xff]  ;;  %s2257_s13 = smov 16   ;;  %vm572_vm2 = vcmask 130048   ;;  %s2258_s16 = smov 112  }
  0x17   : > { %v428_v4 = vsel %vm427_vm1, %v2359_v2, 0.0  ;;  %v431_v5 = vsel %vm427_vm1, %v2361_v3, 0.0  ;;  %v2368_v7 = vshrl.u32 %v455_v6, 7  ;;  %v467_v21 = vld [vmem:[%s2330_s19] sm:$0xff]  ;;  %v2061_v26 = vpack.c.bf16 %v470_v25, %v469_v24  ;;  %v571_v29 = vld [vmem:[%s2340_s26 + $0x8] sm:$0xff]  ;;  %vm2414_vm3 = vmpackc.low %vm572_vm2, %vm572_vm2  ;;  %s2259_s19 = smov 80  }
  0x18   : > { %429 = vadd.xlane.f32.xlu0 %v428_v4  ;;  %v2057_v23 = vpack.c.bf16 %v468_v22, %v467_v21  ;;  %v570_v28 = vld [vmem:[%s2340_s26] sm:$0xff]  ;;  %s2260_s24 = smov 32   ;;  %p1814_p5 = scmp.ne.s32.totalorder %s2318_s10, 1 }
  0x19   : > { %v457_v9 = vsub.s32 0, %v2368_v7  ;;  %v560_v27 = vsub.s32 1, %v2368_v7  ;;  %v2065_v30 = vpack.c.bf16 %v571_v29, %v570_v28  ;;  %v554_v47 = vsub.s32 2, %v2368_v7  ;;  %vm2543_vm10 = vmpackc.low (!%p1814_p5), %vm427_vm1, %vm427_vm1 }
  0x1a   : > { %2058 = vmatprep.subr.bf16.mxu0 %v2057_v23 }
  0x1b   : > { %v2376_v10 = vrot.slane %v2370_v8, %v457_v9  ;;  %2060 = vmatpush3.bf16.msra.mxu0 %v2057_v23  ;;  %v2394_v31 = vrot.slane %v2370_v8, %v560_v27  ;;  %v2405_v49 = vrot.slane %v2370_v8, %v554_v47 }
  0x1c   : > { %432 = vadd.xlane.f32.xlu0 %v431_v5  ;;  %2062 = vmatprep.subr.bf16.mxu0 %v2061_v26 }
  0x1f   : > { %2064 = vmatpush3.bf16.msra.mxu0 %v2061_v26 }
  0x20   : > { %2066 = vmatprep.subr.bf16.mxu0 %v2065_v30 }
  0x32   : > { %462 = vrot.lane.b32.xlu0 %v2376_v10, %s2256_s11 }
  0xa5   : > { %v430_v11 = vpop.xlane.xlu0 %429 }
  0xa6   : > { %v435_v12 = vmul.f32 0.03125, %v430_v11  ;;  %v661_v11 = vadd.s32 8, %v2368_v7 }
  0xa8   : > { %v437_v13 = vsub.f32 %v2359_v2, %v435_v12  ;;  %v663_v12 = vand.u32 127, %v455_v6 }
  0xa9   : > { %v433_v14 = vpop.xlane.xlu0 %432 }
  0xaa   : > { %v436_v15 = vmul.f32 0.03125, %v433_v14  ;;  %v439_v16 = vmul.f32 %v437_v13, %v437_v13  ;;  %v670_v14 = vcvt.s32.f32 %v663_v12  ;;  %vm676_vm5 = vcmp.le.s32.totalorder %v663_v12, %v661_v11 }
  0xab   : > { %vm675_vm7 = vcmp.le.s32.totalorder %v663_v12, %v2368_v7 }
  0xac   : > { %v438_v17 = vsub.f32 %v2361_v3, %v436_v15  ;;  %v441_v18 = vsel %vm427_vm1, %v439_v16, 0.0  ;;  %v664_v15 = vcvt.s32.f32 %v2368_v7 }
  0xad   : > { %442 = vadd.xlane.f32.xlu1 %v441_v18  ;;  %v463_v40 = vpop.permute.xlu0 %462 }
  0xae   : > { %v440_v19 = vmul.f32 %v438_v17, %v438_v17  ;;  %v666_v18 = vmul.f32 0.125, %v664_v15 }
  0xb0   : > { %v444_v20 = vsel %vm427_vm1, %v440_v19, 0.0  ;;  %v668_v21 = vfloor.f32 %v666_v18  ;;  %v682_v18 = vld [vmem:[%s2335_s23 + $0x18] sm:$0xff] }
  0xb1   : > { %445 = vadd.xlane.f32.xlu1 %v444_v20 }
  0xc2   : > { %563 = vrot.lane.b32.xlu1 %v2394_v31, %s2257_s13 }
  0xc6   : > { %654 = vrot.lane.b32.xlu1 %v2394_v31, %s2256_s11 }
 0x13a   : > { %v443_v32 = vpop.xlane.xlu1 %442 }
 0x13b   : > { %v447_v33 = vmul.f32 0.03125, %v443_v32 }
 0x13d   : > { %v449_v34 = vadd.f32 1e-05, %v447_v33 }
 0x13e   : > { %v446_v35 = vpop.xlane.xlu1 %445 }
 0x13f   : > { %2216 = vrsqrt.f32 %v449_v34  ;;  %v448_v36 = vmul.f32 0.03125, %v446_v35 }
 0x141   : > { %v450_v37 = vadd.f32 1e-05, %v448_v36 }
 0x142   : > { %v564_v48 = vpop.permute.xlu1 %563 }
 0x143   : > { %2218 = vrsqrt.f32 %v450_v37 }
 0x146   : > { %v655_v58 = vpop.permute.xlu1 %654 }
 0x149   : > { %v2217_v38 = vpop.eup %2216 }
 0x14a   : > { %v453_v39 = vmul.f32 %v2217_v38, %v437_v13  ;;  %v665_v13 = vcvt.s32.f32 %v661_v11 }
 0x14c   : > { %v459_v41 = vmul.f32 %v2376_v10, %v453_v39  ;;  %v667_v16 = vmul.f32 0.125, %v665_v13 }
 0x14d   : > { %v2219_v42 = vpop.eup %2218 }
 0x14e   : > { %v454_v43 = vmul.f32 %v2219_v42, %v438_v17  ;;  %v465_v44 = vadd.f32 %v463_v40, %v459_v41  ;;  %v671_v17 = vmul.f32 0.125, %v670_v14  ;;  %v669_v19 = vfloor.f32 %v667_v16 }
 0x150   : > { %v460_v45 = vmul.f32 %v2376_v10, %v454_v43  ;;  %1924 = vmatprep.mubr.msk.f32.mxu0 %vm427_vm1, %v465_v44  ;;  %v672_v20 = vfloor.f32 %v671_v17  ;;  %v681_v17 = vld [vmem:[%s2335_s23 + $0x10] sm:$0xff] }
 0x152   : > { %v466_v46 = vadd.f32 %v463_v40, %v460_v45  ;;  %vm674_vm4 = vcmp.eq.f32.partialorder %v669_v19, %v672_v20  ;;  %vm673_vm6 = vcmp.eq.f32.partialorder %v668_v21, %v672_v20  ;;  %v2089_v19 = vpack.c.bf16 %v682_v18, %v681_v17  ;;  %v679_v20 = vld [vmem:[%s2335_s23] sm:$0xff]  ;;  %v680_v21 = vld [vmem:[%s2335_s23 + $0x8] sm:$0xff]  ;;  %s2261_s23 = smov 64  }
 0x153   : > { %vm2430_vm8 = vmand %vm676_vm5, %vm674_vm4  ;;  %v2093_v22 = vpack.c.bf16 %v680_v21, %v679_v20  ;;  %v1401_v21 = vld [vmem:[%s2350_s17 + $0x10] sm:$0xff] }
 0x154   : > { %1925 = vmatmul.mubr.msk.f32.vlgmr.msra.gmra.mrb[0].mxu0 %vm427_vm1, %v466_v46  ;;  %vm2434_vm9 = vmand %vm675_vm7, %vm673_vm6 }
 0x155   : > { %2068 = vmatpush3.bf16.msra.mxu0 %v2065_v30 }
 0x227   : > { %v1926_v50 = vpop.f32.mrb[0].mxu0 }
 0x228   : > { %v567_v51 = vadd.f32 %v1926_v50, %v564_v48  ;;  %v543_v52 = vpop.f32.mrb[1].mxu0  ;;  %v557_v55 = vadd.f32 %v1926_v50, %v2405_v49 }
 0x229   : > { %v556_v53 = vadd.f32 %v2405_v49, %v543_v52  ;;  %v566_v54 = vadd.f32 %v564_v48, %v543_v52 }
 0x22a   : > { %v569_v56 = vmul.f32 0.25, %v567_v51 }
 0x22b   : > { %v568_v57 = vmul.f32 0.25, %v566_v54  ;;  %1931 = vmatprep.mubr.msk.f32.mxu0 %vm572_vm2, %v556_v53 }
 0x22c   : > { %687 = vrot.lane.b32.xlu0 %v569_v56, %s2258_s16  ;;  %1932 = vmatmul.mubr.msk.f32.vlgmr.msra.gmra.mrb[2].mxu0 %vm572_vm2, %v557_v55 }
 0x22d   : > { %685 = vrot.lane.b32.xlu1 %v568_v57, %s2258_s16 }
 0x29e   : > { %v688_v5 = vpop.permute.xlu0 %687 }
 0x29f   : > { %v686_v59 = vpop.permute.xlu1 %685 }
 0x2a0   : > { %1938 = vmatprep.mubr.msk.f32.mxu0 %vm572_vm2, %v686_v59 }
 0x2ff   : > { %v1933_v60 = vpop.f32.mrb[2].mxu0 }
 0x300   : > { %v658_v61 = vadd.f32 %v1933_v60, %v655_v58  ;;  %v645_v62 = vpop.f32.mrb[3].mxu0 }
 0x301   : > { %v657_v63 = vadd.f32 %v655_v58, %v645_v62 }
 0x303   : > { %v2418_v1 = vpack.i.bf16 %v658_v61, %v657_v63  ;;  %v2069_v4 = vpack.c.bf16 %v658_v61, %v657_v63 }
 0x305   : > { %2207 = vrot.lane.b32.xlu1 %v2418_v1, %s2258_s16  ;;  %2071 = vmatprep.subr.msk.bf16.mxu0 %vm2414_vm3, %v2069_v4 }
 0x306   : > { %2074 = vmatpush3.bf16.xpose.msk.msra.mxu0 %vm2414_vm3, %v2069_v4 }
 0x30d   : > { %1939 = vmatmul.mubr.msk.f32.vlgmr.msra.gmra.mrb[4].mxu0 %vm572_vm2, %v688_v5 }
 0x377   : > { %v2208_v30 = vpop.permute.xlu1 %2207 }
 0x378   : > { %v2210_v39 = vunpack.i.h.bf16 %v2208_v30  ;;  %v2209_v40 = vunpack.i.l.bf16 %v2208_v30 }
 0x37a   : > { %v2079_v44 = vpack.c.bf16 %v2210_v39, %v2209_v40 }
 0x3e0   : > { %v1940_v23 = vpop.f32.mrb[4].mxu0 }
 0x3e1   : > { %v775_v24 = vsel %vm2430_vm8, %v1940_v23, -1e+30  ;;  %v765_v25 = vpop.f32.mrb[5].mxu0 }
 0x3e2   : > { %v774_v26 = vsel %vm2434_vm9, %v765_v25, -1e+30  ;;  %v779_v28 = vsel %vm572_vm2, %v775_v24, -inf }
 0x3e3   : > { %780 = vmax.xlane.f32.xlu0 %v779_v28  ;;  %v776_v29 = vsel %vm572_vm2, %v774_v26, -inf }
 0x3e4   : > { %777 = vmax.xlane.f32.xlu1 %v776_v29 }
 0x3f5   : > { %885 = vrot.lane.b32.xlu1 %v568_v57, %s2256_s11 }
 0x3f9   : > { %2202 = vrot.lane.b32.xlu0 %v2418_v1, %s2256_s11 }
 0x3fd   : > { %887 = vrot.lane.b32.xlu0 %v569_v56, %s2256_s11 }
 0x470   : > { %v781_v32 = vpop.xlane.xlu0 %780 }
 0x471   : > { %v783_v33 = vsub.f32 %v775_v24, %v781_v32  ;;  %v778_v34 = vpop.xlane.xlu1 %777 }
 0x472   : > { %v782_v35 = vsub.f32 %v774_v26, %v778_v34 }
 0x473   : > { %v786_v36 = vmul.f32 1.442695, %v783_v33 }
 0x474   : > { %v784_v37 = vmul.f32 1.442695, %v782_v35  ;;  %v2203_v38 = vpop.permute.xlu0 %2202 }
 0x475   : > { %v2205_v41 = vunpack.i.h.bf16 %v2203_v38  ;;  %v2204_v42 = vunpack.i.l.bf16 %v2203_v38  ;;  %v886_v47 = vpop.permute.xlu1 %885 }
 0x476   : > { %2220 = vpow2.f32 %v784_v37 }
 0x477   : > { %2222 = vpow2.f32 %v786_v36  ;;  %v2075_v43 = vpack.c.bf16 %v2205_v41, %v2204_v42 }
 0x478   : > { %v888_v48 = vpop.permute.xlu0 %887 }
 0x479   : > { %2076 = vmatprep.subr.bf16.mxu0 %v2075_v43 }
 0x47a   : > { %2078 = vmatpush3.bf16.msra.mxu0 %v2075_v43 }
 0x47b   : > { %2081 = vmatprep.subr.msk.bf16.mxu0 %vm2414_vm3, %v2079_v44 }
 0x480   : > { %v2221_v45 = vpop.eup %2220 }
 0x481   : > { %v2223_v46 = vpop.eup %2222  ;;  %1945 = vmatprep.mubr.msk.f32.mxu0 %vm572_vm2, %v2221_v45  ;;  %v788_v15 = vsel %vm572_vm2, %v2221_v45, 0.0 }
 0x482   : > { %1946 = vmatmul.mubr.msk.f32.vlgmr.msra.gmra.mrb[6].mxu0 %vm572_vm2, %v2223_v46  ;;  %v791_v16 = vsel %vm572_vm2, %v2223_v46, 0.0 }
 0x483   : > { %2084 = vmatpush3.bf16.xpose.msk.msra.mxu0 %vm2414_vm3, %v2079_v44  ;;  %1952 = vmatprep.mubr.msk.f32.mxu0 %vm572_vm2, %v886_v47 }
 0x48a   : > { %1953 = vmatmul.mubr.msk.f32.vlgmr.msra.gmra.mrb[8].mxu0 %vm572_vm2, %v888_v48 }
 0x555   : > { %v2456_v50 = vpop.f32.mrb[6].mxu0 }
 0x556   : > { %v2458_v51 = vpop.f32.mrb[7].mxu0 }
 0x55d   : > { %v1954_v52 = vpop.f32.mrb[8].mxu0 }
 0x55e   : > { %v977_v53 = vsel %vm2430_vm8, %v1954_v52, -1e+30  ;;  %v967_v54 = vpop.f32.mrb[9].mxu0 }
 0x55f   : > { %v976_v55 = vsel %vm2434_vm9, %v967_v54, -1e+30  ;;  %v981_v56 = vsel %vm572_vm2, %v977_v53, -inf }
 0x560   : > { %982 = vmax.xlane.f32.xlu0 %v981_v56  ;;  %v978_v57 = vsel %vm572_vm2, %v976_v55, -inf  ;;  %v1293_v56 = vld [vmem:[%s2345_s29 + $0x8] sm:$0xff] }
 0x561   : > { %979 = vmax.xlane.f32.xlu1 %v978_v57 }
 0x576   : > { %2212 = vrot.lane.b32.xlu0 %v2418_v1, %s2259_s19 }
 0x5ed   : > { %v983_v58 = vpop.xlane.xlu0 %982 }
 0x5ee   : > { %v985_v59 = vsub.f32 %v977_v53, %v983_v58  ;;  %v980_v60 = vpop.xlane.xlu1 %979  ;;  %v1294_v58 = vld [vmem:[%s2345_s29 + $0x10] sm:$0xff] }
 0x5ef   : > { %v984_v61 = vsub.f32 %v976_v55, %v980_v60  ;;  %v1292_v55 = vld [vmem:[%s2345_s29] sm:$0xff] }
 0x5f0   : > { %v988_v62 = vmul.f32 1.442695, %v985_v59  ;;  %v2097_v57 = vpack.c.bf16 %v1293_v56, %v1292_v55  ;;  %v1295_v59 = vld [vmem:[%s2345_s29 + $0x18] sm:$0xff] }
 0x5f1   : > { %v986_v63 = vmul.f32 1.442695, %v984_v61  ;;  %v2213_v0 = vpop.permute.xlu0 %2212  ;;  %v2101_v60 = vpack.c.bf16 %v1295_v59, %v1294_v58  ;;  %v1399_v61 = vld [vmem:[%s2350_s17] sm:$0xff] }
 0x5f2   : > { %v2215_v4 = vunpack.i.h.bf16 %v2213_v0  ;;  %v2214_v5 = vunpack.i.l.bf16 %v2213_v0  ;;  %2098 = vmatprep.subr.bf16.mxu0 %v2097_v57 }
 0x5f3   : > { %2224 = vpow2.f32 %v986_v63  ;;  %2100 = vmatpush3.bf16.msra.mxu0 %v2097_v57 }
 0x5f4   : > { %2226 = vpow2.f32 %v988_v62  ;;  %v2085_v11 = vpack.c.bf16 %v2215_v4, %v2214_v5  ;;  %2102 = vmatprep.subr.bf16.mxu0 %v2101_v60  ;;  %v1400_v62 = vld [vmem:[%s2350_s17 + $0x8] sm:$0xff] }
 0x5f5   : > { %v2105_v63 = vpack.c.bf16 %v1400_v62, %v1399_v61 }
 0x5f6   : > { %2086 = vmatprep.subr.bf16.mxu1 %v2085_v11 }
 0x5f7   : > { %2088 = vmatpush3.bf16.msra.mxu1 %v2085_v11  ;;  %2104 = vmatpush3.bf16.msra.mxu0 %v2101_v60 }
 0x5f8   : > { %2090 = vmatprep.subr.bf16.mxu1 %v2089_v19 }
 0x5fd   : > { %v2225_v12 = vpop.eup %2224 }
 0x5fe   : > { %v2227_v13 = vpop.eup %2226  ;;  %1959 = vmatprep.mubr.msk.f32.mxu1 %vm572_vm2, %v2225_v12  ;;  %v990_v1 = vsel %vm572_vm2, %v2225_v12, 0.0 }
 0x5ff   : > { %1960 = vmatmul.mubr.msk.f32.vlgmr.msra.gmra.mrb[0].mxu1 %vm572_vm2, %v2227_v13  ;;  %991 = vadd.xlane.f32.xlu1 %v990_v1  ;;  %v993_v14 = vsel %vm572_vm2, %v2227_v13, 0.0 }
 0x600   : > { %2092 = vmatpush3.bf16.msra.mxu1 %v2089_v19 }
 0x601   : > { %2094 = vmatprep.subr.bf16.mxu1 %v2093_v22 }
 0x603   : > { %994 = vadd.xlane.f32.xlu1 %v993_v14 }
 0x607   : > { %789 = vadd.xlane.f32.xlu1 %v788_v15 }
 0x60b   : > { %792 = vadd.xlane.f32.xlu1 %v791_v16 }
 0x61c   : > { %1251 = vrot.lane.b32.xlu1 %v2394_v31, %s2260_s24 }
 0x68c   : > { %v992_v6 = vpop.xlane.xlu1 %991 }
 0x68d   : > { %2228 = vrcp.f32 %v992_v6 }
 0x690   : > { %v995_v23 = vpop.xlane.xlu1 %994 }
 0x694   : > { %v790_v24 = vpop.xlane.xlu1 %789 }
 0x695   : > { %2230 = vrcp.f32 %v790_v24  ;;  %v1404_v24 = vld [vmem:[%s2350_s17 + $0x28] sm:$0xff] }
 0x696   : > { %2232 = vrcp.f32 %v995_v23  ;;  %v1403_v23 = vld [vmem:[%s2350_s17 + $0x20] sm:$0xff] }
 0x697   : > { %v2229_v26 = vpop.eup %2228 }
 0x698   : > { %v793_v25 = vpop.xlane.xlu1 %792 }
 0x699   : > { %2234 = vrcp.f32 %v793_v25  ;;  %v2113_v25 = vpack.c.bf16 %v1404_v24, %v1403_v23  ;;  %v1547_v23 = vld [vmem:[%s2649_s8 + $0x30] sm:$0xff] (!%p1814_p5)  ;;  %v1548_v24 = vld [vmem:[%s2649_s8 + $0x38] sm:$0xff] (!%p1814_p5) }
 0x69c   : > { %v1252_v38 = vpop.permute.xlu1 %1251 }
 0x69f   : > { %v2231_v29 = vpop.eup %2230 }
 0x6a0   : > { %v2233_v32 = vpop.eup %2232  ;;  %v883_v35 = vmul.f32 %v2231_v29, %v2458_v51 }
 0x6a3   : > { %v2235_v31 = vpop.eup %2234 }
 0x6a4   : > { %v884_v36 = vmul.f32 %v2235_v31, %v2456_v50 }
 0x6d2   : > { %v1961_v28 = vpop.f32.mrb[0].mxu1 }
 0x6d3   : > { %v1074_v30 = vpop.f32.mrb[1].mxu1  ;;  %v1086_v34 = vmul.f32 %v2233_v32, %v1961_v28  ;;  %v1406_v28 = vld [vmem:[%s2350_s17 + $0x38] sm:$0xff]  ;;  %v1408_v32 = vld [vmem:[%s2350_s17 + $0x48] sm:$0xff] }
 0x6d4   : > { %v1085_v33 = vmul.f32 %v2229_v26, %v1074_v30  ;;  %v1405_v26 = vld [vmem:[%s2350_s17 + $0x30] sm:$0xff]  ;;  %v1407_v30 = vld [vmem:[%s2350_s17 + $0x40] sm:$0xff] }
 0x6d5   : > { %v2117_v29 = vpack.c.bf16 %v1406_v28, %v1405_v26  ;;  %v1549_v26 = vld [vmem:[%s2649_s8 + $0x40] sm:$0xff] (!%p1814_p5)  ;;  %v1550_v28 = vld [vmem:[%s2649_s8 + $0x48] sm:$0xff] (!%p1814_p5) }
 0x6d6   : > { %1966 = vmatprep.mubr.msk.f32.mxu1 %vm572_vm2, %v1085_v33  ;;  %v1409_v33 = vld [vmem:[%s2350_s17 + $0x50] sm:$0xff] }
 0x6d7   : > { %1967 = vmatmul.mubr.msk.f32.vlgmr.msra.gmra.mrb[2].mxu1 %vm572_vm2, %v1086_v34  ;;  %v2121_v34 = vpack.c.bf16 %v1408_v32, %v1407_v30 }
 0x6d8   : > { %2096 = vmatpush3.bf16.msra.mxu1 %v2093_v22  ;;  %1973 = vmatprep.mubr.msk.f32.mxu1 %vm572_vm2, %v883_v35  ;;  %v1402_v22 = vld [vmem:[%s2350_s17 + $0x18] sm:$0xff] }
 0x6d9   : > { %2106 = vmatprep.subr.bf16.mxu1 %v2105_v63  ;;  %v2109_v6 = vpack.c.bf16 %v1402_v22, %v1401_v21  ;;  %v1410_v35 = vld [vmem:[%s2350_s17 + $0x58] sm:$0xff]  ;;  %v1545_v21 = vld [vmem:[%s2649_s8 + $0x20] sm:$0xff] (!%p1814_p5)  ;;  %v1546_v22 = vld [vmem:[%s2649_s8 + $0x28] sm:$0xff] (!%p1814_p5) }
 0x6da   : > { %v2125_v31 = vpack.c.bf16 %v1410_v35, %v1409_v33 }
 0x6df   : > { %1974 = vmatmul.mubr.msk.f32.vlgmr.msra.gmra.mrb[2].mxu1 %vm572_vm2, %v884_v36  ;;  %v1411_v36 = vld [vmem:[%s2350_s17 + $0x60] sm:$0xff] }
 0x6e0   : > { %2108 = vmatpush3.bf16.msra.mxu1 %v2105_v63 }
 0x6e1   : > { %2110 = vmatprep.subr.bf16.mxu1 %v2109_v6 }
 0x6e4   : > { %2112 = vmatpush3.bf16.msra.mxu1 %v2109_v6  ;;  %v2149_v6 = vpack.c.bf16 (!%p1814_p5), %v1546_v22, %v1545_v21 }
 0x6e5   : > { %2114 = vmatprep.subr.bf16.mxu1 %v2113_v25 }
 0x6e8   : > { %2116 = vmatpush3.bf16.msra.mxu1 %v2113_v25  ;;  %v2155_v25 = vpack.c.bf16 (!%p1814_p5), %v1548_v24, %v1547_v23 }
 0x6e9   : > { %2118 = vmatprep.subr.bf16.mxu1 %v2117_v29 }
 0x6ec   : > { %2120 = vmatpush3.bf16.msra.mxu1 %v2117_v29  ;;  %v2161_v29 = vpack.c.bf16 (!%p1814_p5), %v1550_v28, %v1549_v26 }
 0x6ed   : > { %2122 = vmatprep.subr.bf16.mxu1 %v2121_v34 }
 0x6f0   : > { %2124 = vmatpush3.bf16.msra.mxu1 %v2121_v34 }
 0x6f1   : > { %2126 = vmatprep.subr.bf16.mxu1 %v2125_v31 }
 0x6f4   : > { %2128 = vmatpush3.bf16.msra.mxu1 %v2125_v31 }
 0x7b2   : > { %v1975_v37 = vpop.f32.mrb[2].mxu1 }
 0x7b3   : > { %v1250_v39 = vadd.f32 %v1975_v37, %v2361_v3  ;;  %v1240_v40 = vpop.f32.mrb[3].mxu1  ;;  %v1412_v37 = vld [vmem:[%s2350_s17 + $0x68] sm:$0xff] }
 0x7b4   : > { %v1249_v41 = vadd.f32 %v1240_v40, %v2359_v2  ;;  %v1414_v40 = vld [vmem:[%s2350_s17 + $0x78] sm:$0xff] }
 0x7b5   : > { %v2487_v42 = vadd.f32 %v1252_v38, %v1250_v39  ;;  %v1413_v39 = vld [vmem:[%s2350_s17 + $0x70] sm:$0xff] }
 0x7b6   : > { %v2489_v43 = vadd.f32 %v1252_v38, %v1249_v41  ;;  %v2129_v38 = vpack.c.bf16 %v1412_v37, %v1411_v36  ;;  %v2133_v41 = vpack.c.bf16 %v1414_v40, %v1413_v39  ;;  %v1551_v40 = vld [vmem:[%s2649_s8 + $0x50] sm:$0xff] (!%p1814_p5) }
 0x7b7   : > { %v1259_v44 = vsel %vm427_vm1, %v2487_v42, 0.0 }
 0x7b8   : > { %1260 = vadd.xlane.f32.xlu1 %v1259_v44  ;;  %v1256_v45 = vsel %vm427_vm1, %v2489_v43, 0.0  ;;  %2130 = vmatprep.subr.bf16.mxu1 %v2129_v38  ;;  %v1298_v44 = vsub.s32 3, %v2368_v7 }
 0x7b9   : > { %1257 = vadd.xlane.f32.xlu0 %v1256_v45  ;;  %2132 = vmatpush3.bf16.msra.mxu1 %v2129_v38 }
 0x7ba   : > { %2134 = vmatprep.subr.bf16.mxu1 %v2133_v41  ;;  %v1299_v45 = vrot.slane %v2370_v8, %v1298_v44 }
 0x7bd   : > { %2136 = vmatpush3.bf16.msra.mxu1 %v2133_v41  ;;  %v1552_v41 = vld [vmem:[%s2649_s8 + $0x58] sm:$0xff] (!%p1814_p5) }
 0x7be   : > { %v2167_v44 = vpack.c.bf16 (!%p1814_p5), %v1552_v41, %v1551_v40 }
 0x7c9   : > { %1287 = vrot.lane.b32.xlu1 %v2376_v10, %s2260_s24 }
 0x845   : > { %v1261_v3 = vpop.xlane.xlu1 %1260 }
 0x846   : > { %v1263_v46 = vmul.f32 0.03125, %v1261_v3  ;;  %v1258_v2 = vpop.xlane.xlu0 %1257 }
 0x847   : > { %v1262_v47 = vmul.f32 0.03125, %v1258_v2 }
 0x848   : > { %v1265_v48 = vsub.f32 %v2487_v42, %v1263_v46 }
 0x849   : > { %v1264_v50 = vsub.f32 %v2489_v43, %v1262_v47  ;;  %v1288_v18 = vpop.permute.xlu1 %1287 }
 0x84a   : > { %v1267_v51 = vmul.f32 %v1265_v48, %v1265_v48 }
 0x84b   : > { %v1266_v53 = vmul.f32 %v1264_v50, %v1264_v50 }
 0x84c   : > { %v1271_v52 = vsel %vm427_vm1, %v1267_v51, 0.0 }
 0x84d   : > { %1272 = vadd.xlane.f32.xlu0 %v1271_v52  ;;  %v1268_v54 = vsel %vm427_vm1, %v1266_v53, 0.0 }
 0x851   : > { %1269 = vadd.xlane.f32.xlu0 %v1268_v54 }
 0x867   : > { %1282 = vrot.lane.b32.xlu0 %v2376_v10, %s2261_s23 }
 0x86b   : > { %1416 = vrot.lane.b32.xlu0 %v2405_v49, %s2256_s11 }
 0x8da   : > { %v1273_v0 = vpop.xlane.xlu0 %1272 }
 0x8db   : > { %v1275_v10 = vmul.f32 0.03125, %v1273_v0 }
 0x8dd   : > { %v1277_v4 = vadd.f32 1e-05, %v1275_v10 }
 0x8de   : > { %v1270_v5 = vpop.xlane.xlu0 %1269 }
 0x8df   : > { %2236 = vrsqrt.f32 %v1277_v4  ;;  %v1274_v11 = vmul.f32 0.03125, %v1270_v5 }
 0x8e1   : > { %v1276_v49 = vadd.f32 1e-05, %v1274_v11 }
 0x8e2   : > { %v1283_v1 = vpop.permute.xlu0 %1282 }
 0x8e3   : > { %2238 = vrsqrt.f32 %v1276_v49 }
 0x8e6   : > { %v1417_v4 = vpop.permute.xlu0 %1416 }
 0x8e9   : > { %v2237_v12 = vpop.eup %2236 }
 0x8ea   : > { %v1281_v13 = vmul.f32 %v2237_v12, %v1265_v48 }
 0x8ec   : > { %v1286_v16 = vmul.f32 %v1283_v1, %v1281_v13 }
 0x8ed   : > { %v2239_v14 = vpop.eup %2238 }
 0x8ee   : > { %v1280_v15 = vmul.f32 %v2239_v14, %v1264_v50  ;;  %v1291_v20 = vadd.f32 %v1288_v18, %v1286_v16  ;;  %v1541_v16 = vld [vmem:[%s2649_s8] sm:$0xff] (!%p1814_p5) }
 0x8f0   : > { %v1285_v17 = vmul.f32 %v1283_v1, %v1280_v15 }
 0x8f2   : > { %v1290_v19 = vadd.f32 %v1288_v18, %v1285_v17  ;;  %v1543_v18 = vld [vmem:[%s2649_s8 + $0x10] sm:$0xff] (!%p1814_p5) }
 0x8f4   : > { %1984 = vmatprep.mubr.msk.f32.mxu0 %vm427_vm1, %v1290_v19  ;;  %v1544_v19 = vld [vmem:[%s2649_s8 + $0x18] sm:$0xff] (!%p1814_p5) }
 0x8f5   : > { %1985 = vmatmul.mubr.msk.f32.vlgmr.msra.gmra.mrb[10].mxu0 %vm427_vm1, %v1291_v20  ;;  %v2143_v20 = vpack.c.bf16 (!%p1814_p5), %v1544_v19, %v1543_v18 }
 0x9c8   : > { %v1986_v3 = vpop.f32.mrb[10].mxu0 }
 0x9c9   : > { %v1378_v46 = vadd.f32 %v1986_v3, %v1299_v45  ;;  %v1372_v2 = vpop.f32.mrb[11].mxu0  ;;  %v1554_v3 = vld [vmem:[%s2649_s8 + $0x68] sm:$0xff] (!%p1814_p5) }
 0x9ca   : > { %v1373_v47 = vadd.f32 %v1372_v2, %v1299_v45  ;;  %v1553_v45 = vld [vmem:[%s2649_s8 + $0x60] sm:$0xff] (!%p1814_p5)  ;;  %v1555_v2 = vld [vmem:[%s2649_s8 + $0x70] sm:$0xff] (!%p1814_p5) }
 0x9cb   : > { %v1384_v48 = vmul.f32 0.044715, %v1378_v46  ;;  %v1382_v63 = vmul.f32 0.5, %v1378_v46 }
 0x9cc   : > { %v1383_v50 = vmul.f32 0.044715, %v1373_v47  ;;  %v1381_v8 = vmul.f32 0.5, %v1373_v47 }
 0x9cd   : > { %v1386_v51 = vmul.f32 %v1384_v48, %v1378_v46 }
 0x9ce   : > { %v1385_v52 = vmul.f32 %v1383_v50, %v1373_v47 }
 0x9cf   : > { %v1388_v53 = vmul.f32 %v1386_v51, %v1378_v46 }
 0x9d0   : > { %v1387_v54 = vmul.f32 %v1385_v52, %v1373_v47 }
 0x9d1   : > { %v1390_v55 = vadd.f32 %v1388_v53, %v1378_v46  ;;  %v2173_v46 = vpack.c.bf16 (!%p1814_p5), %v1554_v3, %v1553_v45 }
 0x9d2   : > { %v1389_v56 = vadd.f32 %v1387_v54, %v1373_v47  ;;  %v1556_v47 = vld [vmem:[%s2649_s8 + $0x78] sm:$0xff] (!%p1814_p5) }
 0x9d3   : > { %v1392_v57 = vmul.f32 0.7978846, %v1390_v55  ;;  %v2179_v48 = vpack.c.bf16 (!%p1814_p5), %v1556_v47, %v1555_v2 }
 0x9d4   : > { %v1391_v58 = vmul.f32 0.7978846, %v1389_v56  ;;  %v1502_v56 = vld [vmem:[%s2648_s7] sm:$0x3] (!%p1814_p5) }
 0x9d5   : > { %2240 = vtanh.f32 %v1392_v57  ;;  %v1532_v57 = vrot.slane (!%p1814_p5), %v1502_v56, %v457_v9 }
 0x9d6   : > { %2242 = vtanh.f32 %v1391_v58 }
 0x9df   : > { %v2241_v59 = vpop.eup %2240 }
 0x9e0   : > { %v2243_v60 = vpop.eup %2242  ;;  %v1396_v61 = vadd.f32 1.0, %v2241_v59 }
 0x9e1   : > { %v1395_v62 = vadd.f32 1.0, %v2243_v60  ;;  %v1538_v60 = vrot.slane (!%p1814_p5), %v1502_v56, %v560_v27 }
 0x9e2   : > { %v1398_v10 = vmul.f32 %v1396_v61, %v1382_v63 }
 0x9e3   : > { %v1397_v0 = vmul.f32 %v1395_v62, %v1381_v8 }
 0x9e5   : > { %2019 = vmatprep.mubr.f32.mxu1 %v1397_v0 }
 0x9e6   : > { %2020 = vmatmul.mubr.f32.vlgmr.msra.gmra.mrb[4].mxu1 %v1398_v10 }
 0xab9   : > { %v2021_v5 = vpop.f32.mrb[4].mxu1  ;;  %1501 = sbr.rel (%p1814_p5) target bundleno = 3282 (0xcd2), region = 64 }
 0xaba   : > { %v1491_v11 = vadd.f32 %v2021_v5, %v1417_v4  ;;  %v1485_v49 = vpop.f32.mrb[5].mxu1 }
 0xabb   : > { %v1486_v12 = vadd.f32 %v1485_v49, %v1417_v4 }
 0xabc   : > { %v1495_v13 = vadd.f32 %v1491_v11, %v2487_v42  ;;  %v1542_v42 = vld [vmem:[%s2649_s8 + $0x8] sm:$0xff] (!%p1814_p5) }
 0xabd   : > { %v1494_v1 = vadd.f32 %v1486_v12, %v2489_v43  ;;  %v2137_v17 = vpack.c.bf16 (!%p1814_p5), %v1542_v42, %v1541_v16 }
 0xabe   : > { %1497 = vst.msk [vmem:[#allocation2 + $0x8] sm:$0xff] %vm427_vm1, %v1495_v13  ;;  %v1506_v15 = vsel (!%p1814_p5), %vm427_vm1, %v1495_v13, 0.0 }
 0xabf   : > { %1496 = vst.msk [vmem:[#allocation2] sm:$0xff] %vm427_vm1, %v1494_v1  ;;  %v1503_v14 = vsel (!%p1814_p5), %vm427_vm1, %v1494_v1, 0.0  ;;  %2139 = vmatprep.subr.msk.bf16.mxu0 (!%p1814_p5), %vm2543_vm10, %v2137_v17 }
 0xac0   : > { %1504 = vadd.xlane.f32.xlu0 %v1503_v14  ;;  %2142 = vmatpush3.bf16.xpose.msk.msra.mxu0 %vm2543_vm10, %v2137_v17 }
 0xac1   : > { %2145 = vmatprep.subr.msk.bf16.mxu0 %vm2543_vm10, %v2143_v20 }
 0xac4   : > { %1507 = vadd.xlane.f32.xlu0 %v1506_v15 }
 0xac8   : > { %2148 = vmatpush3.bf16.xpose.msk.msra.mxu0 %vm2543_vm10, %v2143_v20 }
 0xac9   : > { %2151 = vmatprep.subr.msk.bf16.mxu0 %vm2543_vm10, %v2149_v6 }
 0xad0   : > { %2154 = vmatpush3.bf16.xpose.msk.msra.mxu0 %vm2543_vm10, %v2149_v6 }
 0xad1   : > { %2157 = vmatprep.subr.msk.bf16.mxu0 %vm2543_vm10, %v2155_v25 }
 0xad8   : > { %2160 = vmatpush3.bf16.xpose.msk.msra.mxu0 %vm2543_vm10, %v2155_v25 }
 0xad9   : > { %2163 = vmatprep.subr.msk.bf16.mxu0 %vm2543_vm10, %v2161_v29 }
 0xae0   : > { %2166 = vmatpush3.bf16.xpose.msk.msra.mxu0 %vm2543_vm10, %v2161_v29 }
 0xae1   : > { %2169 = vmatprep.subr.msk.bf16.mxu0 %vm2543_vm10, %v2167_v44 }
 0xae8   : > { %2172 = vmatpush3.bf16.xpose.msk.msra.mxu0 %vm2543_vm10, %v2167_v44 }
 0xae9   : > { %2175 = vmatprep.subr.msk.bf16.mxu0 %vm2543_vm10, %v2173_v46 }
 0xaf0   : > { %2178 = vmatpush3.bf16.xpose.msk.msra.mxu0 %vm2543_vm10, %v2173_v46 }
 0xaf1   : > { %2181 = vmatprep.subr.msk.bf16.mxu0 %vm2543_vm10, %v2179_v48 }
 0xaf8   : > { %2184 = vmatpush3.bf16.xpose.msk.msra.mxu0 %vm2543_vm10, %v2179_v48 }
 0xb4d   : > { %v1505_v30 = vpop.xlane.xlu0 %1504 }
 0xb4e   : > { %v1509_v32 = vmul.f32 0.03125, %v1505_v30 }
 0xb50   : > { %v1511_v33 = vsub.f32 %v1494_v1, %v1509_v32 }
 0xb51   : > { %v1508_v34 = vpop.xlane.xlu0 %1507 }
 0xb52   : > { %v1510_v35 = vmul.f32 0.03125, %v1508_v34  ;;  %v1513_v31 = vmul.f32 %v1511_v33, %v1511_v33 }
 0xb54   : > { %v1512_v36 = vsub.f32 %v1495_v13, %v1510_v35  ;;  %v1515_v37 = vsel %vm427_vm1, %v1513_v31, 0.0 }
 0xb55   : > { %1516 = vadd.xlane.f32.xlu1 %v1515_v37 }
 0xb56   : > { %v1514_v38 = vmul.f32 %v1512_v36, %v1512_v36 }
 0xb58   : > { %v1518_v39 = vsel %vm427_vm1, %v1514_v38, 0.0 }
 0xb59   : > { %1519 = vadd.xlane.f32.xlu1 %v1518_v39 }
 0xbe2   : > { %v1517_v50 = vpop.xlane.xlu1 %1516 }
 0xbe3   : > { %v1521_v51 = vmul.f32 0.03125, %v1517_v50 }
 0xbe5   : > { %v1523_v52 = vadd.f32 1e-05, %v1521_v51 }
 0xbe6   : > { %v1520_v53 = vpop.xlane.xlu1 %1519 }
 0xbe7   : > { %2244 = vrsqrt.f32 %v1523_v52  ;;  %v1522_v54 = vmul.f32 0.03125, %v1520_v53 }
 0xbe9   : > { %v1524_v55 = vadd.f32 1e-05, %v1522_v54 }
 0xbeb   : > { %2246 = vrsqrt.f32 %v1524_v55 }
 0xbf1   : > { %v2245_v58 = vpop.eup %2244 }
 0xbf2   : > { %v1527_v59 = vmul.f32 %v2245_v58, %v1511_v33 }
 0xbf4   : > { %v1533_v61 = vmul.f32 %v1532_v57, %v1527_v59 }
 0xbf5   : > { %v2247_v8 = vpop.eup %2246 }
 0xbf6   : > { %v1539_v62 = vadd.f32 %v1538_v60, %v1533_v61  ;;  %v1528_v63 = vmul.f32 %v2247_v8, %v1512_v36 }
 0xbf8   : > { %2054 = vmatprep.mubr.msk.f32.mxu0 %vm427_vm1, %v1539_v62  ;;  %v1534_v0 = vmul.f32 %v1532_v57, %v1528_v63 }
 0xbfa   : > { %v1540_v10 = vadd.f32 %v1538_v60, %v1534_v0 }
 0xbfc   : > { %2055 = vmatmul.mubr.msk.f32.vlgmr.msra.gmra.mrb[0].mxu0 %vm427_vm1, %v1540_v10 }
 0xccf   : > { %v2056_v4 = vpop.f32.mrb[0].mxu0 }
 0xcd0   : > { %1687 = vst [vmem:[%s2650_s9 + $0x8] sm:$0xff] %v2056_v4  ;;  %v1677_v9 = vpop.f32.mrb[1].mxu0 }
 0xcd1   : > { %1686 = vst [vmem:[%s2650_s9] sm:$0xff] %v1677_v9 }
 0xcd2 PF: > { %s19_s30 = sadd.s32 1, %s2254_s30  }
 0xcd3   : > { %p16_p6 = scmp.ge.s32.totalorder %s19_s30, 4  }
 0xcd5   :  { %18 = sbr.rel (!%p16_p6) target bundleno = 1 (0x1), region = 105 }

</bundles_post_ra>
